<compile_context>
chip_gen: v5e
topology: v5e:2x2
jax: 0.10.0
libtpu: 0.0.40
codegen_flags: <defaults>
</compile_context>

<pallas_src>
import functools
import math

import jax
import jax.numpy as jnp
from jax import lax
from jax.experimental import pallas as pl
from jax.experimental.pallas import tpu as pltpu


def _round_up(x, m):
    return (x + m - 1) // m * m


def _round_down(x, m):
    return x // m * m


def _vmem_capacity_bytes():
    """Per-core VMEM capacity; falls back to the smallest generation (v7x)."""
    try:
        return int(pltpu.get_tpu_info().vmem_capacity_bytes)
    except Exception:
        return 64 * 1024 * 1024


_ONE_HOT_MAX_VOCAB = 512        # above this, a one-hot matmul re-reads too much table
_MAX_PREFETCH_TOKENS = 32768    # bounds scalar-prefetch SMEM (next_pow2(4N) = 128 KiB)


# ---------------------------------------------------------------------------
# Plan 1: tiny-vocab one-hot matmul (MXU), table resident in VMEM.
# ---------------------------------------------------------------------------
def _onehot_kernel(ids_ref, lut_ref, out_ref, *, scale, vocab):
    ids = ids_ref[...]                                           # (tile, 1) int32
    iota = lax.broadcasted_iota(jnp.int32, (ids.shape[0], vocab), 1)
    onehot = (ids == iota).astype(lut_ref.dtype)                 # (tile, vocab)
    acc = jnp.dot(onehot, lut_ref[...], preferred_element_type=jnp.float32)
    # Scale hoisted: applied once to the whole tile, not per row.
    out_ref[...] = (acc * scale).astype(out_ref.dtype)


def _forward_onehot(flat_ids, lut, *, tile, scale, vmem_limit):
    n_pad = flat_ids.shape[0]
    vocab, d_model = lut.shape
    n_tiles = n_pad // tile
    ids2d = flat_ids.reshape(n_pad, 1)
    return pl.pallas_call(
        functools.partial(_onehot_kernel, scale=scale, vocab=vocab),
        out_shape=jax.ShapeDtypeStruct((n_pad, d_model), lut.dtype),
        grid_spec=pltpu.PrefetchScalarGridSpec(
            num_scalar_prefetch=0,
            grid=(n_tiles,),
            in_specs=[
                pl.BlockSpec((tile, 1), lambda i: (i, 0)),
                # Constant index_map -> table stays VMEM-resident for the grid.
                pl.BlockSpec((vocab, d_model), lambda i: (0, 0)),
            ],
            out_specs=pl.BlockSpec((tile, d_model), lambda i: (i, 0)),
        ),
        compiler_params=pltpu.CompilerParams(
            dimension_semantics=("parallel",),
            vmem_limit_bytes=vmem_limit,
        ),
    )(ids2d, lut)


# ---------------------------------------------------------------------------
# Plan 2: VMEM-resident table, grouped (8-row) gather with packed stores.
# ---------------------------------------------------------------------------
def _gather_kernel(ids_ref, lut_ref, out_ref, *, scale, tile):
    """ids_ref: SMEM (n_pad,) int32 (scalar prefetch); lut_ref: resident VMEM."""
    base = pl.program_id(0) * tile

    def group(g, carry):
        off = pl.multiple_of(g * 8, 8)
        # Gather 8 rows, assemble them into one (8, d_model) block in registers
        # (XLU work, which has slack), scale once, then ONE unmasked store
        # instead of 8 per-row masked vst's.
        rows = [lut_ref[pl.ds(ids_ref[base + off + k], 1), :] for k in range(8)]
        block = jnp.concatenate(rows, axis=0)                    # (8, d_model)
        out_ref[pl.ds(off, 8), :] = (block * scale).astype(out_ref.dtype)
        return carry

    lax.fori_loop(0, tile // 8, group, 0)


def _forward_resident_gather(flat_ids, lut, *, tile, scale, vmem_limit):
    n_pad = flat_ids.shape[0]
    vocab, d_model = lut.shape
    n_tiles = n_pad // tile
    return pl.pallas_call(
        functools.partial(_gather_kernel, scale=scale, tile=tile),
        out_shape=jax.ShapeDtypeStruct((n_pad, d_model), lut.dtype),
        grid_spec=pltpu.PrefetchScalarGridSpec(
            num_scalar_prefetch=1,
            grid=(n_tiles,),
            in_specs=[
                # Full-array block, constant index_map -> DMA'd from HBM once,
                # resident across all token tiles.
                pl.BlockSpec((vocab, d_model), lambda i, ids: (0, 0)),
            ],
            out_specs=pl.BlockSpec((tile, d_model), lambda i, ids: (i, 0)),
        ),
        compiler_params=pltpu.CompilerParams(
            dimension_semantics=("parallel",),
            vmem_limit_bytes=vmem_limit,
        ),
    )(flat_ids, lut)


# ---------------------------------------------------------------------------
# Plan 3: HBM row-gather fallback (table too large for VMEM).
# ---------------------------------------------------------------------------
def _hbm_row_kernel(ids_ref, row_ref, out_ref, *, scale):
    out_ref[...] = (row_ref[...] * scale).astype(out_ref.dtype)


def _forward_hbm_gather(flat_ids, lut, *, scale, vmem_limit):
    # TODO(synk): upgrade to a manual pltpu.make_async_copy double-buffered
    # multi-row gather (memory_space=pl.ANY) to overlap row DMAs; this per-row
    # pl.Element gather is the correctness fallback for tables that exceed VMEM.
    n_pad = flat_ids.shape[0]
    vocab, d_model = lut.shape
    return pl.pallas_call(
        functools.partial(_hbm_row_kernel, scale=scale),
        out_shape=jax.ShapeDtypeStruct((n_pad, d_model), lut.dtype),
        grid_spec=pltpu.PrefetchScalarGridSpec(
            num_scalar_prefetch=1,
            grid=(n_pad,),
            in_specs=[
                pl.BlockSpec((pl.Element(1), d_model),
                             lambda i, ids: (ids[i], 0)),
            ],
            out_specs=pl.BlockSpec((1, d_model), lambda i, ids: (i, 0)),
        ),
        compiler_params=pltpu.CompilerParams(
            dimension_semantics=("arbitrary",),
            vmem_limit_bytes=vmem_limit,
        ),
    )(flat_ids, lut)


# ---------------------------------------------------------------------------
# Dispatch + wrapper.
# ---------------------------------------------------------------------------
def _forward_chunk(flat_ids, lut, *, tokens_per_tile, scale):
    """One pallas_call over <= _MAX_PREFETCH_TOKENS tokens."""
    n_tok = flat_ids.shape[0]
    vocab, d_model = lut.shape
    itemsize = lut.dtype.itemsize

    vmem_cap = _vmem_capacity_bytes()                 # per-core (v7x: 64 MiB)
    budget = max(vmem_cap - (16 << 20), 8 << 20)      # leave DMA/scratch headroom
    lut_bytes = vocab * d_model * itemsize
    resident_bytes = 2 * lut_bytes                    # assume pipeline double-buffers it

    use_onehot = vocab <= _ONE_HOT_MAX_VOCAB
    per_tok = 2 * d_model * itemsize + (vocab * 4 if use_onehot else 0) + 8
    fits_resident = resident_bytes + 8 * per_tok <= budget

    if fits_resident:
        # VMEM-aware tile size: never trade the resident table for a bigger tile.
        tile_cap = max((budget - resident_bytes) // per_tok, 8)
        tile = min(tokens_per_tile, _round_up(n_tok, 8), _round_down(tile_cap, 8))
        tile = max(_round_down(tile, 8), 8)
        n_pad = _round_up(n_tok, tile)
        ids = flat_ids
        if n_pad != n_tok:
            ids = jnp.pad(ids, (0, n_pad - n_tok))    # padded slots read row 0
        needed = resident_bytes + tile * per_tok + (2 << 20)
        vmem_limit = int(min(vmem_cap, max(needed, 32 << 20)))
        if use_onehot:
            out = _forward_onehot(ids, lut, tile=tile, scale=scale,
                                  vmem_limit=vmem_limit)
        else:
            out = _forward_resident_gather(ids, lut, tile=tile, scale=scale,
                                           vmem_limit=vmem_limit)
        return out[:n_tok] if n_pad != n_tok else out

    # Table does not fit this generation's per-core VMEM -> stream rows from HBM.
    vmem_limit = int(min(vmem_cap, 32 << 20))
    return _forward_hbm_gather(flat_ids, lut, scale=scale, vmem_limit=vmem_limit)


def embeddings_forward(token_ids, lut, *, tokens_per_tile=256):
    """token_ids: (B, S) int; lut: (vocab, d_model) -> (B, S, d_model) scaled."""
    B, S = token_ids.shape
    vocab, d_model = lut.shape
    scale = float(math.sqrt(d_model))
    n_tok = B * S

    # Bounds safety: clamp (PyTorch nn.Embedding would raise on OOB indices).
    flat_ids = jnp.clip(token_ids.reshape(n_tok).astype(jnp.int32), 0, vocab - 1)

    if n_tok <= _MAX_PREFETCH_TOKENS:
        out = _forward_chunk(flat_ids, lut,
                             tokens_per_tile=tokens_per_tile, scale=scale)
    else:
        # Chunk so each call's scalar/SMEM footprint stays bounded.
        chunks = []
        for start in range(0, n_tok, _MAX_PREFETCH_TOKENS):
            stop = min(start + _MAX_PREFETCH_TOKENS, n_tok)
            chunks.append(_forward_chunk(flat_ids[start:stop], lut,
                                         tokens_per_tile=tokens_per_tile,
                                         scale=scale))
        out = jnp.concatenate(chunks, axis=0)

    return out.reshape(B, S, d_model)


if __name__ == "__main__":
    # Small shapes consistent with the module: vocab=64, d_model=32, B=2, S=8.
    vocab, d_model = 64, 32
    B, S = 2, 8

    key = jax.random.PRNGKey(0)
    k_ids, k_lut = jax.random.split(key)

    token_ids = jax.random.randint(k_ids, (B, S), 0, vocab, dtype=jnp.int32)
    # nn.Embedding default init ~ N(0, 1); deterministic synthetic weights.
    lut = jax.random.normal(k_lut, (vocab, d_model), dtype=jnp.float32)

    out = embeddings_forward(token_ids, lut)
    out = jax.block_until_ready(out)

    # Reference check (plain JAX) to confirm semantics.
    ref = jnp.take(lut, token_ids, axis=0) * math.sqrt(d_model)
    assert out.shape == (B, S, d_model)
    assert jnp.allclose(out, ref, atol=1e-5), "mismatch vs reference"

    print("KERNEL_OK")
</pallas_src>

<mosaic_0001>
module attributes {stable_mosaic.version = 11 : i64} {
  func.func @_onehot_kernel(%arg0: i32, %arg1: memref<16x1xi32, #tpu.memory_space<vmem>>, %arg2: memref<64x32xf32, #tpu.memory_space<vmem>>, %arg3: memref<16x32xf32, #tpu.memory_space<vmem>>) attributes {dimension_semantics = [#tpu.dimension_semantics<parallel>], iteration_bounds = array<i64: 1>, scalar_prefetch = 0 : i64, scratch_operands = 0 : i64, tpu.core_type = #tpu.core_type<tc>, window_params = [{transform_indices = @transform_0, window_bounds = array<i64: 16, 1>}, {pipeline_mode = #tpu.pipeline_mode<synchronous>, transform_indices = @transform_1, window_bounds = array<i64: 64, 32>}, {transform_indices = @transform_2, window_bounds = array<i64: 16, 32>}]} {
    %c0 = arith.constant 0 : index
    %c0_0 = arith.constant 0 : index
    %0 = vector.load %arg1[%c0, %c0_0] : memref<16x1xi32, #tpu.memory_space<vmem>>, vector<16x1xi32>
    %1 = tpu.iota {dimensions = array<i32: 1>} : vector<16x64xi32>
    %2 = vector.broadcast %0 : vector<16x1xi32> to vector<16x64xi32>
    %3 = arith.cmpi eq, %2, %1 : vector<16x64xi32>
    %4 = arith.extui %3 : vector<16x64xi1> to vector<16x64xi32>
    %5 = arith.sitofp %4 : vector<16x64xi32> to vector<16x64xf32>
    %c0_1 = arith.constant 0 : index
    %c0_2 = arith.constant 0 : index
    %6 = vector.load %arg2[%c0_1, %c0_2] : memref<64x32xf32, #tpu.memory_space<vmem>>, vector<64x32xf32>
    %cst = arith.constant dense<0.000000e+00> : vector<16x32xf32>
    %7 = tpu.matmul %5, %6, %cst {dimension_numbers = #tpu.dot_dimension_numbers<[1], [0], [0], [1], [0, 0, 1, 1], [], []>} : vector<16x64xf32>, vector<64x32xf32>, vector<16x32xf32> -> vector<16x32xf32>
    %cst_3 = arith.constant 5.65685415 : f32
    %8 = vector.broadcast %cst_3 : f32 to vector<16x32xf32>
    %9 = arith.mulf %7, %8 : vector<16x32xf32>
    %c0_4 = arith.constant 0 : index
    %c0_5 = arith.constant 0 : index
    %10 = vector.load %arg3[%c0_4, %c0_5] : memref<16x32xf32, #tpu.memory_space<vmem>>, vector<16x32xf32>
    tpu.vector_store %arg3[%c0_4, %c0_5], %9 {strides = array<i32>} : memref<16x32xf32, #tpu.memory_space<vmem>>, vector<16x32xf32>,
    return
  }
  func.func @transform_0(%arg0: i32) -> (i32, i32) {
    %c0_i32 = arith.constant 0 : i32
    %c0_i32_0 = arith.constant 0 : i32
    return %arg0, %c0_i32 : i32, i32
  }
  func.func @transform_1(%arg0: i32) -> (i32, i32) {
    %c0_i32 = arith.constant 0 : i32
    %c0_i32_0 = arith.constant 0 : i32
    %c0_i32_1 = arith.constant 0 : i32
    return %c0_i32, %c0_i32_0 : i32, i32
  }
  func.func @transform_2(%arg0: i32) -> (i32, i32) {
    %c0_i32 = arith.constant 0 : i32
    %c0_i32_0 = arith.constant 0 : i32
    return %arg0, %c0_i32 : i32, i32
  }
}

</mosaic_0001>

<bundles_post_ra>
// kernel: tpu_custom_call.1
= control target key start
LH: loop header
LB: loop body
LE: loop exit
PB: predicated region body
PF: predicated region fallthrough
CT: control target
= control target key end

     0   :  { %v133_v2 = vmov 0   ;;  %s186_s0 = inlined_call_operand.vmem [shape: s32[16,1], index: 0, kind: input, shape index: {}]   ;;  %s187_s1 = inlined_call_operand.vmem [shape: f32[64,32], index: 1, kind: input, shape index: {}]   ;;  %s188_s2 = inlined_call_operand.hbm [shape: f32[16,32], index: 2, kind: output, shape index: {}]  }
   0x1   :  { %v12_v0 = vld [vmem:[%s186_s0] sm:$0xff]  ;;  %v35_v1 = vld [vmem:[%s187_s1 + $0x38] sm:$0xff]  ;;  %106 = vset.pattern.permute.xlu0 %v133_v2  ;;  %v34_v3 = vld [vmem:[%s187_s1 + $0x30] sm:$0xff] }
   0x2   :  { %51 = vmatpush.msra.mxu0 %v35_v1  ;;  %17 = vperm.xlu0 %106, %v12_v0   ;;  %v33_v4 = vld [vmem:[%s187_s1 + $0x28] sm:$0xff] }
   0x3   :  { %93 = vmatpush.msra.mxu1 %v35_v1 }
   0x4   :  { %52 = vmatpush.msra.mxu0 %v34_v3 }
   0x5   :  { %7 = vsyncpa [#allocation3], 0  ;;  %v32_v5 = vld [vmem:[%s187_s1 + $0x20] sm:$0xff]  ;;  %94 = vmatpush.msra.mxu1 %v34_v3  ;;  %v31_v6 = vld [vmem:[%s187_s1 + $0x18] sm:$0xff]  ;;  %v14_v11 = vlaneseq  ;;  %vm36_vm0 = vcmask 523264   ;;  %v134_v14 = vmov 0.0  }
   0x6   :  { %53 = vmatpush.msra.mxu0 %v33_v4  ;;  %v13_v7 = vld [vmem:[%s186_s0 + $0x8] sm:$0xff]  ;;  %v30_v8 = vld [vmem:[%s187_s1 + $0x10] sm:$0xff]  ;;  %v28_v10 = vld [vmem:[%s187_s1] sm:$0xff]  ;;  %vm68_vm3 = vcmask 261120   ;;  %s135_s0 = smov [#allocation2]   ;;  %s77_s3 = sshll.u32 %s188_s2, 4  ;;  %s78_s3 = int_to_ptr.hbm [resolvable:$true] %s77_s3 }
   0x7   :  { %95 = vmatpush.msra.mxu1 %v33_v4  ;;  %v29_v9 = vld [vmem:[%s187_s1 + $0x8] sm:$0xff]  ;;  %v15_v12 = vand.u32 127, %v14_v11  ;;  %s75_s1 = sshll.u32 %s135_s0, 4  ;;  %s136_s4 = smov 128   ;;  %s76_s1 = int_to_ptr.vmem [resolvable:$true] %s75_s1 }
   0x8   :  { %54 = vmatpush.msra.mxu0 %v32_v5  ;;  %s137_s5 = smov 8  }
   0x9   :  { %96 = vmatpush.msra.mxu1 %v32_v5 }
   0xa   :  { %55 = vmatpush.msra.mxu0 %v31_v6  ;;  %20 = vperm.xlu0 %106, %v13_v7  }
   0xb   :  { %97 = vmatpush.msra.mxu1 %v31_v6 }
   0xc   :  { %56 = vmatpush.msra.mxu0 %v30_v8 }
   0xd   :  { %98 = vmatpush.msra.mxu1 %v30_v8 }
   0xe   :  { %57 = vmatpush.msra.mxu0 %v29_v9 }
   0xf   :  { %99 = vmatpush.msra.mxu1 %v29_v9 }
  0x10   :  { %58 = vmatpush.msra.mxu0 %v28_v10 }
  0x11   :  { %100 = vmatpush.msra.mxu1 %v28_v10 }
  0x74   :  { %v18_v13 = vpop.permute.xlu0 %17 }
  0x75   :  { %vm22_vm1 = vcmp.eq.s32.totalorder %v18_v13, %v15_v12 }
  0x76   :  { %v89_v15 = vsel %vm22_vm1, 1.0, %v134_v14 }
  0x77   :  { %91 = vmatmul.msk.f32.vlgmr.msra.gmra.mxu0 %vm36_vm0, %v89_v15 }
  0x7c   :  { %v21_v16 = vpop.permute.xlu0 %20 }
  0x7d   :  { %vm23_vm2 = vcmp.eq.s32.totalorder %v21_v16, %v15_v12 }
  0x7e   :  { %v90_v17 = vsel %vm23_vm2, 1.0, %v134_v14 }
  0x7f   :  { %92 = vmatmul.msk.f32.vlgmr.msra.gmra.mxu1 %vm36_vm0, %v90_v17 }
  0xf4   :  { %v60_v18 = vpop.f32.mrf.mxu0 }
  0xf5   :  { %v66_v19 = vmul.f32 5.656854, %v60_v18 }
  0xf7   :  { %69 = vst.msk [vmem:[#allocation2] sm:$0xff] %vm68_vm3, %v66_v19 }
  0xfc   :  { %v63_v20 = vpop.f32.mrf.mxu1 }
  0xfd   :  { %v67_v21 = vmul.f32 5.656854, %v63_v20 }
  0xff   :  { %70 = vst.msk [vmem:[#allocation2 + $0x8] sm:$0xff] %vm68_vm3, %v67_v21 }
 0x100   :  { %83 = dma.vmem_to_hbm [thread:$0]  %s76_s1, 256, %s78_s3, [#allocation3], %s136_s4, %s136_s4, %s137_s5  }
 0x101   :  { %131 = dma.done.wait [#allocation3], 256  }
 0x102   :  { %132 = vsyncadd [#allocation3], 4294967040 }
 0x103   :  { %88 = vsyncpa [#allocation3], 1 }

</bundles_post_ra>
